<compile_context>
chip_gen: v7x
topology: tpu7x:2x2x1
jax: 0.10.0
libtpu: 0.0.40
codegen_flags: <defaults>
</compile_context>

<pallas_src>
import jax
import jax.numpy as jnp
from jax.experimental import pallas as pl
from jax.experimental.pallas import tpu as pltpu

# ----- model hyper-params (small, consistent with the module) -----
BATCH = 2
SEQ = 8
EMB = 32
NUM_HEADS = 4
HEAD_DIM = EMB // NUM_HEADS
SCALE = EMB ** (-0.5)          # NOTE: PyTorch module scales by emb_size**-0.5 (intentional)
LN_EPS = 1e-5
# nn.Dropout is constructed in __init__ but never applied in forward() -> no-op here.


def attention_kernel(x_ref, wqkv_ref, g_ref, b_ref, o_ref, acc_ref):
    """Single-step kernel over the full batch.

    x_ref    : [B, S, E]   input
    wqkv_ref : [E, 3E]     fused, pre-transposed Q|K|V weights ([in, out])
    g_ref    : [1, E]      LayerNorm gamma
    b_ref    : [1, E]      LayerNorm beta
    o_ref    : [B, S, E]   output
    acc_ref  : [B, S, E]   f32 VMEM scratch holding concatenated head outputs
    """
    B, S, E = x_ref.shape

    # Fused QKV projection: one MXU matmul for the whole batch.
    # Leading-dim merge/split reshapes are layout-free on TPU.
    x2 = x_ref[...].reshape(B * S, E)                               # [B*S, E]
    qkv = jnp.dot(x2, wqkv_ref[...],
                  preferred_element_type=jnp.float32)               # [B*S, 3E]
    qkv = qkv.reshape(B, S, 3 * E)                                  # [B, S, 3E]

    # Per-head attention, batched over B inside each einsum. Static loop over
    # NUM_HEADS; head outputs are written straight into their lane offsets of
    # the VMEM scratch (no concatenate).
    for h in range(NUM_HEADS):
        lo = h * HEAD_DIM
        qh = qkv[:, :, lo:lo + HEAD_DIM]                            # [B, S, D]
        kh = qkv[:, :, EMB + lo:EMB + lo + HEAD_DIM]                # [B, S, D]
        vh = qkv[:, :, 2 * EMB + lo:2 * EMB + lo + HEAD_DIM]        # [B, S, D]

        scores = jnp.einsum("bqd,bkd->bqk", qh, kh,
                            preferred_element_type=jnp.float32) * SCALE
        scores = scores - jnp.max(scores, axis=-1, keepdims=True)
        p = jnp.exp(scores)
        # approx=True -> EUP vrcp slot (otherwise idle in this kernel).
        p = p * pl.reciprocal(jnp.sum(p, axis=-1, keepdims=True), approx=True)

        acc_ref[:, :, lo:lo + HEAD_DIM] = jnp.einsum(
            "bqk,bkd->bqd", p, vh, preferred_element_type=jnp.float32)

    # LayerNorm over the embedding axis (biased variance, like nn.LayerNorm).
    out = acc_ref[...]                                              # [B, S, E]
    mean = jnp.mean(out, axis=-1, keepdims=True)
    centered = out - mean
    var = jnp.mean(centered * centered, axis=-1, keepdims=True)
    normed = centered * jax.lax.rsqrt(var + LN_EPS)
    y = normed * g_ref[0] + b_ref[0]

    o_ref[...] = y.astype(o_ref.dtype)


def attention_forward(x, wq, wk, wv, gamma, beta):
    """x: [B, S, E]; wq/wk/wv: [E, E] already transposed to [in, out]."""
    B, S, E = x.shape
    w_qkv = jnp.concatenate([wq, wk, wv], axis=1)   # [E, 3E] fused projection
    gamma2d = gamma.reshape(1, E)
    beta2d = beta.reshape(1, E)

    return pl.pallas_call(
        attention_kernel,
        out_shape=jax.ShapeDtypeStruct((B, S, E), x.dtype),
        grid_spec=pltpu.PrefetchScalarGridSpec(
            num_scalar_prefetch=0,
            grid=(1,),                                   # single step: whole batch at once
            in_specs=[
                pl.BlockSpec((B, S, E), lambda i: (0, 0, 0)),   # x
                pl.BlockSpec((E, 3 * E), lambda i: (0, 0)),     # fused W_qkv
                pl.BlockSpec((1, E), lambda i: (0, 0)),         # gamma
                pl.BlockSpec((1, E), lambda i: (0, 0)),         # beta
            ],
            out_specs=pl.BlockSpec((B, S, E), lambda i: (0, 0, 0)),
            scratch_shapes=[pltpu.VMEM((B, S, E), jnp.float32)],
        ),
        compiler_params=pltpu.CompilerParams(
            dimension_semantics=("arbitrary",)),
    )(x, w_qkv, gamma2d, beta2d)


def attention_reference(x, wq, wk, wv, gamma, beta):
    """Pure-JAX reference mirroring the PyTorch forward exactly."""
    B, S, E = x.shape
    H, D = NUM_HEADS, HEAD_DIM
    k = (x @ wk).reshape(B, S, H, D).transpose(0, 2, 3, 1)   # [B,H,D,S]
    v = (x @ wv).reshape(B, S, H, D).transpose(0, 2, 1, 3)   # [B,H,S,D]
    q = (x @ wq).reshape(B, S, H, D).transpose(0, 2, 1, 3)   # [B,H,S,D]
    attn = jnp.einsum("bhsd,bhdt->bhst", q, k) * SCALE
    attn = jax.nn.softmax(attn, axis=-1)
    out = jnp.einsum("bhst,bhtd->bhsd", attn, v)
    out = out.transpose(0, 2, 1, 3).reshape(B, S, E)
    mean = out.mean(-1, keepdims=True)
    var = ((out - mean) ** 2).mean(-1, keepdims=True)
    normed = (out - mean) / jnp.sqrt(var + LN_EPS)
    return normed * gamma + beta


if __name__ == "__main__":
    key = jax.random.PRNGKey(0)
    kx, kq, kk, kv = jax.random.split(key, 4)

    x = jax.random.normal(kx, (BATCH, SEQ, EMB), dtype=jnp.float32)

    # PyTorch stores Linear weight as [out, in]; we keep the [in, out]-transposed
    # form so the kernel computes x @ W = x @ W_pt^T.
    wq = jax.random.normal(kq, (EMB, EMB), dtype=jnp.float32) * 0.05
    wk = jax.random.normal(kk, (EMB, EMB), dtype=jnp.float32) * 0.05
    wv = jax.random.normal(kv, (EMB, EMB), dtype=jnp.float32) * 0.05
    gamma = jnp.ones((EMB,), dtype=jnp.float32)   # nn.LayerNorm default weight
    beta = jnp.zeros((EMB,), dtype=jnp.float32)   # nn.LayerNorm default bias

    out = attention_forward(x, wq, wk, wv, gamma, beta)
    out = jax.block_until_ready(out)

    ref = attention_reference(x, wq, wk, wv, gamma, beta)
    assert out.shape == (BATCH, SEQ, EMB)
    # Slightly looser tolerance than before: softmax denom uses the EUP
    # approximate reciprocal (pl.reciprocal(approx=True)).
    assert jnp.allclose(out, ref, atol=2e-3, rtol=2e-3), "mismatch vs reference"

    print("KERNEL_OK")
</pallas_src>

<mosaic_0001>
module attributes {stable_mosaic.version = 11 : i64} {
  func.func @attention_kernel(%arg0: i32, %arg1: memref<2x8x32xf32, #tpu.memory_space<vmem>>, %arg2: memref<32x96xf32, #tpu.memory_space<vmem>>, %arg3: memref<1x32xf32, #tpu.memory_space<vmem>>, %arg4: memref<1x32xf32, #tpu.memory_space<vmem>>, %arg5: memref<2x8x32xf32, #tpu.memory_space<vmem>>, %arg6: memref<2x8x32xf32, #tpu.memory_space<vmem>>) attributes {dimension_semantics = [#tpu.dimension_semantics<arbitrary>], iteration_bounds = array<i64: 1>, scalar_prefetch = 0 : i64, scratch_operands = 1 : i64, tpu.core_type = #tpu.core_type<tc>, window_params = [{pipeline_mode = #tpu.pipeline_mode<synchronous>, transform_indices = @transform_0, window_bounds = array<i64: 2, 8, 32>}, {pipeline_mode = #tpu.pipeline_mode<synchronous>, transform_indices = @transform_1, window_bounds = array<i64: 32, 96>}, {pipeline_mode = #tpu.pipeline_mode<synchronous>, transform_indices = @transform_2, window_bounds = array<i64: 1, 32>}, {pipeline_mode = #tpu.pipeline_mode<synchronous>, transform_indices = @transform_3, window_bounds = array<i64: 1, 32>}, {pipeline_mode = #tpu.pipeline_mode<synchronous>, transform_indices = @transform_4, window_bounds = array<i64: 2, 8, 32>}]} {
    %c0 = arith.constant 0 : index
    %c0_0 = arith.constant 0 : index
    %c0_1 = arith.constant 0 : index
    %0 = vector.load %arg1[%c0, %c0_0, %c0_1] : memref<2x8x32xf32, #tpu.memory_space<vmem>>, vector<2x8x32xf32>
    %1 = vector.shape_cast %0 : vector<2x8x32xf32> to vector<16x32xf32>
    %c0_2 = arith.constant 0 : index
    %c0_3 = arith.constant 0 : index
    %2 = vector.load %arg2[%c0_2, %c0_3] : memref<32x96xf32, #tpu.memory_space<vmem>>, vector<32x96xf32>
    %cst = arith.constant dense<0.000000e+00> : vector<16x96xf32>
    %3 = tpu.matmul %1, %2, %cst {dimension_numbers = #tpu.dot_dimension_numbers<[1], [0], [0], [1], [0, 0, 1, 1], [], []>} : vector<16x32xf32>, vector<32x96xf32>, vector<16x96xf32> -> vector<16x96xf32>
    %4 = vector.shape_cast %3 : vector<16x96xf32> to vector<2x8x96xf32>
    %5 = vector.extract_strided_slice %4 {offsets = [0, 0, 0], sizes = [2, 8, 8], strides = [1, 1, 1]} : vector<2x8x96xf32> to vector<2x8x8xf32>
    %6 = vector.extract_strided_slice %4 {offsets = [0, 0, 32], sizes = [2, 8, 8], strides = [1, 1, 1]} : vector<2x8x96xf32> to vector<2x8x8xf32>
    %7 = vector.extract_strided_slice %4 {offsets = [0, 0, 64], sizes = [2, 8, 8], strides = [1, 1, 1]} : vector<2x8x96xf32> to vector<2x8x8xf32>
    "tpu.trace_start"() <{level = 10 : i32, message = "bqd,bkd->bqk"}> : () -> ()
    %cst_4 = arith.constant dense<0.000000e+00> : vector<2x8x8xf32>
    %8 = tpu.matmul %5, %6, %cst_4 {dimension_numbers = #tpu.dot_dimension_numbers<[2], [2], [1], [1], [0, 0, 0, 1, 1, 1], [0], [0]>} : vector<2x8x8xf32>, vector<2x8x8xf32>, vector<2x8x8xf32> -> vector<2x8x8xf32>
    "tpu.trace_stop"() : () -> ()
    %cst_5 = arith.constant 0.176776692 : f32
    %9 = vector.broadcast %cst_5 : f32 to vector<2x8x8xf32>
    %10 = arith.mulf %8, %9 : vector<2x8x8xf32>
    %cst_6 = arith.constant dense<0xFF800000> : vector<2x8xf32>
    %11 = vector.multi_reduction <maximumf>, %10, %cst_6 [2] : vector<2x8x8xf32> to vector<2x8xf32>
    %12 = vector.shape_cast %11 : vector<2x8xf32> to vector<2x8x1xf32>
    %13 = vector.broadcast %12 : vector<2x8x1xf32> to vector<2x8x8xf32>
    %14 = arith.subf %10, %13 : vector<2x8x8xf32>
    %15 = math.exp %14 : vector<2x8x8xf32>
    %cst_7 = arith.constant dense<0.000000e+00> : vector<2x8xf32>
    %16 = vector.multi_reduction <add>, %15, %cst_7 [2] : vector<2x8x8xf32> to vector<2x8xf32>
    %17 = vector.shape_cast %16 : vector<2x8xf32> to vector<2x8x1xf32>
    %18 = tpu.reciprocal %17 {approx = true} : vector<2x8x1xf32> -> vector<2x8x1xf32>
    %19 = vector.broadcast %18 : vector<2x8x1xf32> to vector<2x8x8xf32>
    %20 = arith.mulf %15, %19 : vector<2x8x8xf32>
    "tpu.trace_start"() <{level = 10 : i32, message = "bqk,bkd->bqd"}> : () -> ()
    %cst_8 = arith.constant dense<0.000000e+00> : vector<2x8x8xf32>
    %21 = tpu.matmul %20, %7, %cst_8 {dimension_numbers = #tpu.dot_dimension_numbers<[2], [1], [1], [2], [0, 0, 0, 1, 1, 2], [0], [0]>} : vector<2x8x8xf32>, vector<2x8x8xf32>, vector<2x8x8xf32> -> vector<2x8x8xf32>
    "tpu.trace_stop"() : () -> ()
    %c0_9 = arith.constant 0 : index
    %c0_10 = arith.constant 0 : index
    %c0_11 = arith.constant 0 : index
    %22 = vector.load %arg6[%c0_9, %c0_10, %c0_11] : memref<2x8x32xf32, #tpu.memory_space<vmem>>, vector<2x8x8xf32>
    tpu.vector_store %arg6[%c0_9, %c0_10, %c0_11], %21 {strides = array<i32>} : memref<2x8x32xf32, #tpu.memory_space<vmem>>, vector<2x8x8xf32>,
    %23 = vector.extract_strided_slice %4 {offsets = [0, 0, 8], sizes = [2, 8, 8], strides = [1, 1, 1]} : vector<2x8x96xf32> to vector<2x8x8xf32>
    %24 = vector.extract_strided_slice %4 {offsets = [0, 0, 40], sizes = [2, 8, 8], strides = [1, 1, 1]} : vector<2x8x96xf32> to vector<2x8x8xf32>
    %25 = vector.extract_strided_slice %4 {offsets = [0, 0, 72], sizes = [2, 8, 8], strides = [1, 1, 1]} : vector<2x8x96xf32> to vector<2x8x8xf32>
    "tpu.trace_start"() <{level = 10 : i32, message = "bqd,bkd->bqk"}> : () -> ()
    %cst_12 = arith.constant dense<0.000000e+00> : vector<2x8x8xf32>
    %26 = tpu.matmul %23, %24, %cst_12 {dimension_numbers = #tpu.dot_dimension_numbers<[2], [2], [1], [1], [0, 0, 0, 1, 1, 1], [0], [0]>} : vector<2x8x8xf32>, vector<2x8x8xf32>, vector<2x8x8xf32> -> vector<2x8x8xf32>
    "tpu.trace_stop"() : () -> ()
    %cst_13 = arith.constant 0.176776692 : f32
    %27 = vector.broadcast %cst_13 : f32 to vector<2x8x8xf32>
    %28 = arith.mulf %26, %27 : vector<2x8x8xf32>
    %cst_14 = arith.constant dense<0xFF800000> : vector<2x8xf32>
    %29 = vector.multi_reduction <maximumf>, %28, %cst_14 [2] : vector<2x8x8xf32> to vector<2x8xf32>
    %30 = vector.shape_cast %29 : vector<2x8xf32> to vector<2x8x1xf32>
    %31 = vector.broadcast %30 : vector<2x8x1xf32> to vector<2x8x8xf32>
    %32 = arith.subf %28, %31 : vector<2x8x8xf32>
    %33 = math.exp %32 : vector<2x8x8xf32>
    %cst_15 = arith.constant dense<0.000000e+00> : vector<2x8xf32>
    %34 = vector.multi_reduction <add>, %33, %cst_15 [2] : vector<2x8x8xf32> to vector<2x8xf32>
    %35 = vector.shape_cast %34 : vector<2x8xf32> to vector<2x8x1xf32>
    %36 = tpu.reciprocal %35 {approx = true} : vector<2x8x1xf32> -> vector<2x8x1xf32>
    %37 = vector.broadcast %36 : vector<2x8x1xf32> to vector<2x8x8xf32>
    %38 = arith.mulf %33, %37 : vector<2x8x8xf32>
    "tpu.trace_start"() <{level = 10 : i32, message = "bqk,bkd->bqd"}> : () -> ()
    %cst_16 = arith.constant dense<0.000000e+00> : vector<2x8x8xf32>
    %39 = tpu.matmul %38, %25, %cst_16 {dimension_numbers = #tpu.dot_dimension_numbers<[2], [1], [1], [2], [0, 0, 0, 1, 1, 2], [0], [0]>} : vector<2x8x8xf32>, vector<2x8x8xf32>, vector<2x8x8xf32> -> vector<2x8x8xf32>
    "tpu.trace_stop"() : () -> ()
    %c0_17 = arith.constant 0 : index
    %c0_18 = arith.constant 0 : index
    %c8 = arith.constant 8 : index
    %40 = vector.load %arg6[%c0_17, %c0_18, %c8] : memref<2x8x32xf32, #tpu.memory_space<vmem>>, vector<2x8x8xf32>
    tpu.vector_store %arg6[%c0_17, %c0_18, %c8], %39 {strides = array<i32>} : memref<2x8x32xf32, #tpu.memory_space<vmem>>, vector<2x8x8xf32>,
    %41 = vector.extract_strided_slice %4 {offsets = [0, 0, 16], sizes = [2, 8, 8], strides = [1, 1, 1]} : vector<2x8x96xf32> to vector<2x8x8xf32>
    %42 = vector.extract_strided_slice %4 {offsets = [0, 0, 48], sizes = [2, 8, 8], strides = [1, 1, 1]} : vector<2x8x96xf32> to vector<2x8x8xf32>
    %43 = vector.extract_strided_slice %4 {offsets = [0, 0, 80], sizes = [2, 8, 8], strides = [1, 1, 1]} : vector<2x8x96xf32> to vector<2x8x8xf32>
    "tpu.trace_start"() <{level = 10 : i32, message = "bqd,bkd->bqk"}> : () -> ()
    %cst_19 = arith.constant dense<0.000000e+00> : vector<2x8x8xf32>
    %44 = tpu.matmul %41, %42, %cst_19 {dimension_numbers = #tpu.dot_dimension_numbers<[2], [2], [1], [1], [0, 0, 0, 1, 1, 1], [0], [0]>} : vector<2x8x8xf32>, vector<2x8x8xf32>, vector<2x8x8xf32> -> vector<2x8x8xf32>
    "tpu.trace_stop"() : () -> ()
    %cst_20 = arith.constant 0.176776692 : f32
    %45 = vector.broadcast %cst_20 : f32 to vector<2x8x8xf32>
    %46 = arith.mulf %44, %45 : vector<2x8x8xf32>
    %cst_21 = arith.constant dense<0xFF800000> : vector<2x8xf32>
    %47 = vector.multi_reduction <maximumf>, %46, %cst_21 [2] : vector<2x8x8xf32> to vector<2x8xf32>
    %48 = vector.shape_cast %47 : vector<2x8xf32> to vector<2x8x1xf32>
    %49 = vector.broadcast %48 : vector<2x8x1xf32> to vector<2x8x8xf32>
    %50 = arith.subf %46, %49 : vector<2x8x8xf32>
    %51 = math.exp %50 : vector<2x8x8xf32>
    %cst_22 = arith.constant dense<0.000000e+00> : vector<2x8xf32>
    %52 = vector.multi_reduction <add>, %51, %cst_22 [2] : vector<2x8x8xf32> to vector<2x8xf32>
    %53 = vector.shape_cast %52 : vector<2x8xf32> to vector<2x8x1xf32>
    %54 = tpu.reciprocal %53 {approx = true} : vector<2x8x1xf32> -> vector<2x8x1xf32>
    %55 = vector.broadcast %54 : vector<2x8x1xf32> to vector<2x8x8xf32>
    %56 = arith.mulf %51, %55 : vector<2x8x8xf32>
    "tpu.trace_start"() <{level = 10 : i32, message = "bqk,bkd->bqd"}> : () -> ()
    %cst_23 = arith.constant dense<0.000000e+00> : vector<2x8x8xf32>
    %57 = tpu.matmul %56, %43, %cst_23 {dimension_numbers = #tpu.dot_dimension_numbers<[2], [1], [1], [2], [0, 0, 0, 1, 1, 2], [0], [0]>} : vector<2x8x8xf32>, vector<2x8x8xf32>, vector<2x8x8xf32> -> vector<2x8x8xf32>
    "tpu.trace_stop"() : () -> ()
    %c0_24 = arith.constant 0 : index
    %c0_25 = arith.constant 0 : index
    %c16 = arith.constant 16 : index
    %58 = vector.load %arg6[%c0_24, %c0_25, %c16] : memref<2x8x32xf32, #tpu.memory_space<vmem>>, vector<2x8x8xf32>
    tpu.vector_store %arg6[%c0_24, %c0_25, %c16], %57 {strides = array<i32>} : memref<2x8x32xf32, #tpu.memory_space<vmem>>, vector<2x8x8xf32>,
    %59 = vector.extract_strided_slice %4 {offsets = [0, 0, 24], sizes = [2, 8, 8], strides = [1, 1, 1]} : vector<2x8x96xf32> to vector<2x8x8xf32>
    %60 = vector.extract_strided_slice %4 {offsets = [0, 0, 56], sizes = [2, 8, 8], strides = [1, 1, 1]} : vector<2x8x96xf32> to vector<2x8x8xf32>
    %61 = vector.extract_strided_slice %4 {offsets = [0, 0, 88], sizes = [2, 8, 8], strides = [1, 1, 1]} : vector<2x8x96xf32> to vector<2x8x8xf32>
    "tpu.trace_start"() <{level = 10 : i32, message = "bqd,bkd->bqk"}> : () -> ()
    %cst_26 = arith.constant dense<0.000000e+00> : vector<2x8x8xf32>
    %62 = tpu.matmul %59, %60, %cst_26 {dimension_numbers = #tpu.dot_dimension_numbers<[2], [2], [1], [1], [0, 0, 0, 1, 1, 1], [0], [0]>} : vector<2x8x8xf32>, vector<2x8x8xf32>, vector<2x8x8xf32> -> vector<2x8x8xf32>
    "tpu.trace_stop"() : () -> ()
    %cst_27 = arith.constant 0.176776692 : f32
    %63 = vector.broadcast %cst_27 : f32 to vector<2x8x8xf32>
    %64 = arith.mulf %62, %63 : vector<2x8x8xf32>
    %cst_28 = arith.constant dense<0xFF800000> : vector<2x8xf32>
    %65 = vector.multi_reduction <maximumf>, %64, %cst_28 [2] : vector<2x8x8xf32> to vector<2x8xf32>
    %66 = vector.shape_cast %65 : vector<2x8xf32> to vector<2x8x1xf32>
    %67 = vector.broadcast %66 : vector<2x8x1xf32> to vector<2x8x8xf32>
    %68 = arith.subf %64, %67 : vector<2x8x8xf32>
    %69 = math.exp %68 : vector<2x8x8xf32>
    %cst_29 = arith.constant dense<0.000000e+00> : vector<2x8xf32>
    %70 = vector.multi_reduction <add>, %69, %cst_29 [2] : vector<2x8x8xf32> to vector<2x8xf32>
    %71 = vector.shape_cast %70 : vector<2x8xf32> to vector<2x8x1xf32>
    %72 = tpu.reciprocal %71 {approx = true} : vector<2x8x1xf32> -> vector<2x8x1xf32>
    %73 = vector.broadcast %72 : vector<2x8x1xf32> to vector<2x8x8xf32>
    %74 = arith.mulf %69, %73 : vector<2x8x8xf32>
    "tpu.trace_start"() <{level = 10 : i32, message = "bqk,bkd->bqd"}> : () -> ()
    %cst_30 = arith.constant dense<0.000000e+00> : vector<2x8x8xf32>
    %75 = tpu.matmul %74, %61, %cst_30 {dimension_numbers = #tpu.dot_dimension_numbers<[2], [1], [1], [2], [0, 0, 0, 1, 1, 2], [0], [0]>} : vector<2x8x8xf32>, vector<2x8x8xf32>, vector<2x8x8xf32> -> vector<2x8x8xf32>
    "tpu.trace_stop"() : () -> ()
    %c0_31 = arith.constant 0 : index
    %c0_32 = arith.constant 0 : index
    %c24 = arith.constant 24 : index
    %76 = vector.load %arg6[%c0_31, %c0_32, %c24] : memref<2x8x32xf32, #tpu.memory_space<vmem>>, vector<2x8x8xf32>
    tpu.vector_store %arg6[%c0_31, %c0_32, %c24], %75 {strides = array<i32>} : memref<2x8x32xf32, #tpu.memory_space<vmem>>, vector<2x8x8xf32>,
    %c0_33 = arith.constant 0 : index
    %c0_34 = arith.constant 0 : index
    %c0_35 = arith.constant 0 : index
    %77 = vector.load %arg6[%c0_33, %c0_34, %c0_35] : memref<2x8x32xf32, #tpu.memory_space<vmem>>, vector<2x8x32xf32>
    %cst_36 = arith.constant dense<0.000000e+00> : vector<2x8xf32>
    %78 = vector.multi_reduction <add>, %77, %cst_36 [2] : vector<2x8x32xf32> to vector<2x8xf32>
    %79 = vector.shape_cast %78 : vector<2x8xf32> to vector<2x8x1xf32>
    %cst_37 = arith.constant 3.200000e+01 : f32
    %80 = vector.broadcast %cst_37 : f32 to vector<2x8x1xf32>
    %81 = arith.divf %79, %80 : vector<2x8x1xf32>
    %82 = vector.broadcast %81 : vector<2x8x1xf32> to vector<2x8x32xf32>
    %83 = arith.subf %77, %82 : vector<2x8x32xf32>
    %84 = arith.mulf %83, %83 : vector<2x8x32xf32>
    %cst_38 = arith.constant dense<0.000000e+00> : vector<2x8xf32>
    %85 = vector.multi_reduction <add>, %84, %cst_38 [2] : vector<2x8x32xf32> to vector<2x8xf32>
    %86 = vector.shape_cast %85 : vector<2x8xf32> to vector<2x8x1xf32>
    %cst_39 = arith.constant 3.200000e+01 : f32
    %87 = vector.broadcast %cst_39 : f32 to vector<2x8x1xf32>
    %88 = arith.divf %86, %87 : vector<2x8x1xf32>
    %cst_40 = arith.constant 9.99999974E-6 : f32
    %89 = vector.broadcast %cst_40 : f32 to vector<2x8x1xf32>
    %90 = arith.addf %88, %89 : vector<2x8x1xf32>
    %91 = math.rsqrt %90 : vector<2x8x1xf32>
    %92 = vector.broadcast %91 : vector<2x8x1xf32> to vector<2x8x32xf32>
    %93 = arith.mulf %83, %92 : vector<2x8x32xf32>
    %c0_41 = arith.constant 0 : index
    %c0_42 = arith.constant 0 : index
    %94 = vector.load %arg3[%c0_41, %c0_42] : memref<1x32xf32, #tpu.memory_space<vmem>>, vector<1x32xf32>
    %95 = vector.shape_cast %94 : vector<1x32xf32> to vector<32xf32>
    %96 = vector.shape_cast %95 : vector<32xf32> to vector<1x1x32xf32>
    %97 = vector.broadcast %96 : vector<1x1x32xf32> to vector<2x8x32xf32>
    %98 = arith.mulf %93, %97 : vector<2x8x32xf32>
    %c0_43 = arith.constant 0 : index
    %c0_44 = arith.constant 0 : index
    %99 = vector.load %arg4[%c0_43, %c0_44] : memref<1x32xf32, #tpu.memory_space<vmem>>, vector<1x32xf32>
    %100 = vector.shape_cast %99 : vector<1x32xf32> to vector<32xf32>
    %101 = vector.shape_cast %100 : vector<32xf32> to vector<1x1x32xf32>
    %102 = vector.broadcast %101 : vector<1x1x32xf32> to vector<2x8x32xf32>
    %103 = arith.addf %98, %102 : vector<2x8x32xf32>
    %c0_45 = arith.constant 0 : index
    %c0_46 = arith.constant 0 : index
    %c0_47 = arith.constant 0 : index
    %104 = vector.load %arg5[%c0_45, %c0_46, %c0_47] : memref<2x8x32xf32, #tpu.memory_space<vmem>>, vector<2x8x32xf32>
    tpu.vector_store %arg5[%c0_45, %c0_46, %c0_47], %103 {strides = array<i32>} : memref<2x8x32xf32, #tpu.memory_space<vmem>>, vector<2x8x32xf32>,
    return
  }
  func.func @transform_0(%arg0: i32) -> (i32, i32, i32) {
    %c0_i32 = arith.constant 0 : i32
    %c0_i32_0 = arith.constant 0 : i32
    %c0_i32_1 = arith.constant 0 : i32
    %c0_i32_2 = arith.constant 0 : i32
    return %c0_i32, %c0_i32_0, %c0_i32_1 : i32, i32, i32
  }
  func.func @transform_1(%arg0: i32) -> (i32, i32) {
    %c0_i32 = arith.constant 0 : i32
    %c0_i32_0 = arith.constant 0 : i32
    %c0_i32_1 = arith.constant 0 : i32
    return %c0_i32, %c0_i32_0 : i32, i32
  }
  func.func @transform_2(%arg0: i32) -> (i32, i32) {
    %c0_i32 = arith.constant 0 : i32
    %c0_i32_0 = arith.constant 0 : i32
    %c0_i32_1 = arith.constant 0 : i32
    return %c0_i32, %c0_i32_0 : i32, i32
  }
  func.func @transform_3(%arg0: i32) -> (i32, i32) {
    %c0_i32 = arith.constant 0 : i32
    %c0_i32_0 = arith.constant 0 : i32
    %c0_i32_1 = arith.constant 0 : i32
    return %c0_i32, %c0_i32_0 : i32, i32
  }
  func.func @transform_4(%arg0: i32) -> (i32, i32, i32) {
    %c0_i32 = arith.constant 0 : i32
    %c0_i32_0 = arith.constant 0 : i32
    %c0_i32_1 = arith.constant 0 : i32
    %c0_i32_2 = arith.constant 0 : i32
    return %c0_i32, %c0_i32_0, %c0_i32_1 : i32, i32, i32
  }
}

</mosaic_0001>

<bundles_post_ra>
// kernel: tpu_custom_call.1
= control target key start
LH: loop header
LB: loop body
LE: loop exit
PB: predicated region body
PF: predicated region fallthrough
CT: control target
= control target key end

     0   :  { %9 = vsyncpa [#allocation4], 0  ;;  %s2088_s0 = inlined_call_operand.hbm [shape: f32[2,8,32], index: 0, kind: input, shape index: {}]   ;;  %s2089_s1 = inlined_call_operand.hbm [shape: f32[32,96], index: 1, kind: input, shape index: {}]   ;;  %s2090_s2 = inlined_call_operand.vmem [shape: f32[1,32], index: 2, kind: input, shape index: {}]   ;;  %s2091_s3 = inlined_call_operand.vmem [shape: f32[1,32], index: 3, kind: input, shape index: {}]   ;;  %s2092_s4 = inlined_call_operand.hbm [shape: f32[2,8,32], index: 4, kind: output, shape index: {}]  }
   0x1   :  { %10 = vsyncpa [#allocation7], 0 }
   0x2   :  { %11 = vsyncpa [#allocation5], 0  ;;  %s1856_s15 = smov [#allocation3]   ;;  %s1784_s19 = scalar_lea.hbm %s2088_s0, 256 }
   0x3   :  { %s17_s16 = sshll.u32 %s1856_s15, 4  ;;  %p1785_p0 = scmp.ne.s32.totalorder %s2088_s0, %s1784_s19  ;;  %s18_s16 = int_to_ptr.vmem [resolvable:$true] %s17_s16 }
   0x4   :  { %p1788_p1 = scmp.lt.u32.totalorder %s1784_s19, %s2088_s0 }
   0x6   :  { %p1790_p2 = pnand %p1788_p1, %p1785_p0 }
   0x8   :  { %1793 = shalt.err (!%p1790_p2)
}
   0x9   :  { %s1794_s24 = scalar_lea.vmem %s18_s16, 256  ;;  %p1799_p4 = scmp.lt.s32.totalorder %s18_s16, %s18_s16 }
   0xa   :  { %p1795_p3 = scmp.ne.s32.totalorder %s18_s16, %s1794_s24  ;;  %p1800_p5 = scmp.lt.s32.totalorder %s1794_s24, %s1794_s24 }
   0xc   :  { %p1801_p6 = por %p1800_p5, %p1799_p4 }
   0xe   :  { %p1802_p7 = pnand %p1801_p6, %p1795_p3 }
  0x10   :  { %1805 = shalt.err (!%p1802_p7)
}
  0x11   :  { %s1857_s25 = smov 128   ;;  %s1858_s26 = smov 8  }
  0x12   :  { %23 = dma.hbm_to_vmem [thread:$0]  %s2088_s0, 256, %s18_s16, [#allocation4], %s1857_s25, %s1857_s25, %s1858_s26  }
  0x13   :  { %s1859_s29 = smov [#allocation6]   ;;  %s1806_s7 = scalar_lea.hbm %s2089_s1, 512 }
  0x14   :  { %s29_s30 = sshll.u32 %s1859_s29, 4  ;;  %p1807_p8 = scmp.ne.s32.totalorder %s2089_s1, %s1806_s7  ;;  %s30_s30 = int_to_ptr.vmem [resolvable:$true] %s29_s30 }
  0x15   :  { %p1810_p9 = scmp.lt.u32.totalorder %s1806_s7, %s2089_s1 }
  0x17   :  { %p1812_p10 = pnand %p1810_p9, %p1807_p8 }
  0x19   :  { %1815 = shalt.err (!%p1812_p10)
}
  0x1a   :  { %s1816_s12 = scalar_lea.vmem %s30_s30, 512  ;;  %p1821_p12 = scmp.lt.s32.totalorder %s30_s30, %s30_s30 }
  0x1b   :  { %p1817_p11 = scmp.ne.s32.totalorder %s30_s30, %s1816_s12  ;;  %p1822_p13 = scmp.lt.s32.totalorder %s1816_s12, %s1816_s12 }
  0x1d   :  { %p1823_p0 = por %p1822_p13, %p1821_p12 }
  0x1f   :  { %p1824_p1 = pnand %p1823_p0, %p1817_p11 }
  0x21   :  { %1827 = shalt.err (!%p1824_p1)
}
  0x22   :  { %35 = dma.hbm_to_vmem [thread:$0]  %s2089_s1, 512, %s30_s30, [#allocation7], %s1857_s25, %s1857_s25, %s1858_s26  }
  0x23   :  { %1850 = dma.done.wait [#allocation4], 256  }
  0x24   :  { %1851 = vsyncadd [#allocation4], 4294967040 }
  0x25   :  { %1852 = dma.done.wait [#allocation7], 512  }
  0x26   :  { %1853 = vsyncadd [#allocation7], 4294966784  ;;  %vm52_vm0 = vcmask 261120   ;;  %v48_v0 = vld [vmem:[#allocation6] sm:$0xff]  ;;  %v49_v1 = vld [vmem:[#allocation6 + $0x8] sm:$0xff]  ;;  %v1860_v8 = vmov 0.0  }
  0x27   :  { %v50_v2 = vld [vmem:[#allocation6 + $0x10] sm:$0xff]  ;;  %v1720_v3 = vpack.c.bf16 %v49_v1, %v48_v0  ;;  %v51_v4 = vld [vmem:[#allocation6 + $0x18] sm:$0xff]  ;;  %1640 = vmatprep.subr.mxu1 %v1860_v8  ;;  %vm1861_vm1 = vmmov 0   ;;  %s1862_s1 = smov 96   ;;  %vm137_vm2 = vcmask 64512   ;;  %s1863_s14 = smov 64  }
  0x28   :  { %v46_v5 = vld [vmem:[#allocation3] sm:$0xff]  ;;  %v1724_v6 = vpack.c.bf16 %v51_v4, %v50_v2  ;;  %v47_v7 = vld [vmem:[#allocation3 + $0x8] sm:$0xff]  ;;  %1642 = vmatprep.mubr.msk.f32.mxu1 %vm1861_vm1, %v1860_v8  ;;  %s1864_s15 = smov 88   ;;  %s1865_s16 = smov 120   ;;  %vm807_vm3 = vcmask 130112   ;;  %vm1150_vm4 = vcmask 195712  }
  0x29   :  { %1637 = vmatprep.mubr.msk.f32.mxu0 %vm52_vm0, %v46_v5  ;;  %1721 = vmatprep.subr.bf16.mxu0 %v1720_v3  ;;  %s1866_s17 = smov 56   ;;  %s1867_s18 = smov 80   ;;  %vm1493_vm5 = vcmask 261312  }
  0x2a   :  { %1723 = vmatpush3.bf16.msra.mxu0 %v1720_v3  ;;  %s1868_s19 = smov 112   ;;  %s1869_s20 = smov 48  }
  0x2b   :  { %1725 = vmatprep.subr.bf16.mxu0 %v1724_v6  ;;  %s1870_s21 = smov 72   ;;  %s1871_s22 = smov 104  }
  0x2c   :  { %s1872_s23 = smov 40   ;;  %s1873_s24 = smov 16  }
  0x2d   :  { %s1874_s27 = smov 24   ;;  %s1875_s6 = smov [#allocation8]  }
  0x2e   :  { %1727 = vmatpush3.bf16.msra.mxu0 %v1724_v6  ;;  %s1550_s7 = sshll.u32 %s1875_s6, 4  ;;  %s1551_s7 = int_to_ptr.vmem [resolvable:$true] %s1550_s7 }
  0x2f   :  { %1650 = vmatprep.subr.mxu0 %v1860_v8  ;;  %s1828_s8 = scalar_lea.vmem %s1551_s7, 256  ;;  %p1833_p3 = scmp.lt.s32.totalorder %s1551_s7, %s1551_s7 }
  0x30   :  { %p1829_p2 = scmp.ne.s32.totalorder %s1551_s7, %s1828_s8  ;;  %p1834_p4 = scmp.lt.s32.totalorder %s1828_s8, %s1828_s8 }
  0x31   :  { %1638 = vmatmul.mubr.msk.f32.vlgmr.msra.gmra.mrb[0].mxu0 %vm52_vm0, %v47_v7 }
  0x32   :  { %1652 = vmatprep.mubr.msk.f32.mxu0 %vm1861_vm1, %v1860_v8  ;;  %p1835_p5 = por %p1834_p4, %p1833_p3 }
  0x34   :  { %p1836_p6 = pnand %p1835_p5, %p1829_p2 }
 0x104   :  { %v1939_v9 = vpop.f32.mrb[0].mxu0 }
 0x105   :  { %v1941_v10 = vpop.f32.mrb[1].mxu0 }
 0x106   :  { %135 = vrot.lane.b32.xlu0 %v1941_v10, %s1862_s1 }
 0x10a   :  { %213 = vrot.lane.b32.xlu0 %v1939_v9, %s1862_s1 }
 0x178   :  { %v136_v11 = vpop.permute.xlu0 %135 }
 0x179   :  { %1641 = vmatpush3.xpose.msk.msra.mxu1 %vm137_vm2, %v136_v11 }
 0x17a   :  { %1645 = vmatprep.subr.mxu1 %v1860_v8 }
 0x17c   :  { %1643 = vmatmul.mubr.msk.f32.vlgmr.msra.gmra.mrb[0].mxu1 %vm137_vm2, %v1941_v10  ;;  %v214_v12 = vpop.permute.xlu0 %213 }
 0x17d   :  { %1646 = vmatpush3.xpose.msk.msra.mxu1 %vm137_vm2, %v214_v12  ;;  %1647 = vmatprep.mubr.msk.f32.mxu1 %vm1861_vm1, %v1860_v8 }
 0x17e   :  { %1655 = vmatprep.subr.mxu1 %v1860_v8 }
 0x180   :  { %1648 = vmatmul.mubr.msk.f32.vlgmr.msra.gmra.mrb[2].mxu1 %vm137_vm2, %v1939_v9 }
 0x181   :  { %1657 = vmatprep.mubr.msk.f32.mxu1 %vm1861_vm1, %v1860_v8 }
 0x24f   :  { %v208_v13 = vpop.f32.mrb[0].mxu1 }
 0x250   :  { %v289_v14 = vmul.f32 0.17677669, %v208_v13  ;;  %v1644_v15 = vpop.f32.mrb[1].mxu1 }
 0x252   :  { %v291_v16 = vsel %vm137_vm2, %v289_v14, -inf }
 0x253   :  { %292 = vmax.xlane.f32.xlu1 %v291_v16  ;;  %v285_v17 = vpop.f32.mrb[2].mxu1 }
 0x254   :  { %v290_v18 = vmul.f32 0.17677669, %v285_v17  ;;  %v1649_v19 = vpop.f32.mrb[3].mxu1 }
 0x256   :  { %v294_v20 = vsel %vm137_vm2, %v290_v18, -inf }
 0x257   :  { %295 = vmax.xlane.f32.xlu1 %v294_v20 }
 0x268   :  { %313 = vrot.lane.b32.xlu1 %v1941_v10, %s1863_s14 }
 0x26c   :  { %389 = vrot.lane.b32.xlu1 %v1939_v9, %s1863_s14 }
 0x270   :  { %469 = vrot.lane.b32.xlu1 %v1941_v10, %s1864_s15 }
 0x274   :  { %547 = vrot.lane.b32.xlu1 %v1939_v9, %s1864_s15 }
 0x2e0   :  { %v293_v21 = vpop.xlane.xlu1 %292 }
 0x2e1   :  { %v297_v22 = vsub.f32 %v289_v14, %v293_v21 }
 0x2e3   :  { %v299_v23 = vmul.f32 1.442695, %v297_v22 }
 0x2e4   :  { %v296_v24 = vpop.xlane.xlu1 %295 }
 0x2e5   :  { %1748 = vpow2.f32 %v299_v23  ;;  %v298_v25 = vsub.f32 %v290_v18, %v296_v24 }
 0x2e7   :  { %v301_v26 = vmul.f32 1.442695, %v298_v25 }
 0x2e8   :  { %v314_v27 = vpop.permute.xlu1 %313 }
 0x2e9   :  { %1750 = vpow2.f32 %v301_v26  ;;  %1651 = vmatpush3.msra.mxu0 %v314_v27 }
 0x2ea   :  { %1660 = vmatprep.subr.mxu0 %v1860_v8 }
 0x2ec   :  { %v390_v28 = vpop.permute.xlu1 %389 }
 0x2ed   :  { %1656 = vmatpush3.msra.mxu1 %v390_v28 }
 0x2ee   :  { %1665 = vmatprep.subr.mxu1 %v1860_v8 }
 0x2ef   :  { %v1749_v29 = vpop.eup %1748 }
 0x2f0   :  { %v303_v30 = vsel %vm137_vm2, %v1749_v29, 0.0  ;;  %v470_v33 = vpop.permute.xlu1 %469 }
 0x2f1   :  { %304 = vadd.xlane.f32.xlu0 %v303_v30 }
 0x2f3   :  { %v1751_v31 = vpop.eup %1750 }
 0x2f4   :  { %v306_v32 = vsel %vm137_vm2, %v1751_v31, 0.0  ;;  %v548_v34 = vpop.permute.xlu1 %547 }
 0x2f5   :  { %307 = vadd.xlane.f32.xlu1 %v306_v32 }
 0x306   :  { %545 = vrot.lane.b32.xlu1 %v1939_v9, %s1865_s16 }
 0x307   :  { %467 = vrot.lane.b32.xlu0 %v1941_v10, %s1865_s16 }
 0x37e   :  { %v305_v35 = vpop.xlane.xlu0 %304 }
 0x37f   :  { %1752 = vrcp.f32 %v305_v35 }
 0x382   :  { %v308_v36 = vpop.xlane.xlu1 %307  ;;  %v468_v41 = vpop.permute.xlu0 %467 }
 0x383   :  { %1754 = vrcp.f32 %v308_v36 }
 0x386   :  { %v546_v42 = vpop.permute.xlu1 %545 }
 0x389   :  { %v1753_v37 = vpop.eup %1752 }
 0x38a   :  { %v311_v38 = vmul.f32 %v1753_v37, %v1749_v29 }
 0x38c   :  { %1653 = vmatmul.mubr.msk.f32.vlgmr.msra.gmra.mrb[2].mxu0 %vm137_vm2, %v311_v38 }
 0x38d   :  { %v1755_v39 = vpop.eup %1754  ;;  %1661 = vmatpush3.xpose.msk.msra.mxu0 %vm137_vm2, %v470_v33  ;;  %1662 = vmatprep.mubr.msk.f32.mxu0 %vm1861_vm1, %v1860_v8 }
 0x38e   :  { %v312_v40 = vmul.f32 %v1755_v39, %v1751_v31  ;;  %1670 = vmatprep.subr.mxu0 %v1860_v8 }
 0x390   :  { %1658 = vmatmul.mubr.msk.f32.vlgmr.msra.gmra.mrb[4].mxu1 %vm137_vm2, %v312_v40  ;;  %1663 = vmatmul.mubr.msk.f32.vlgmr.msra.gmra.mrb[4].mxu0 %vm137_vm2, %v468_v41 }
 0x391   :  { %1666 = vmatpush3.xpose.msk.msra.mxu1 %vm137_vm2, %v548_v34  ;;  %1667 = vmatprep.mubr.msk.f32.mxu1 %vm1861_vm1, %v1860_v8 }
 0x392   :  { %1675 = vmatprep.subr.mxu1 %v1860_v8  ;;  %1672 = vmatprep.mubr.msk.f32.mxu0 %vm1861_vm1, %v1860_v8 }
 0x394   :  { %1668 = vmatmul.mubr.msk.f32.vlgmr.msra.gmra.mrb[6].mxu1 %vm137_vm2, %v546_v42 }
 0x395   :  { %1677 = vmatprep.mubr.msk.f32.mxu1 %vm1861_vm1, %v1860_v8 }
 0x45f   :  { %v385_v43 = vpop.f32.mrb[2].mxu0 }
 0x460   :  { %465 = vst.msk [vmem:[#allocation2] sm:$0xff] %vm137_vm2, %v385_v43  ;;  %v1654_v44 = vpop.f32.mrb[3].mxu0 }
 0x463   :  { %v461_v45 = vpop.f32.mrb[4].mxu1  ;;  %v541_v46 = vpop.f32.mrb[4].mxu0 }
 0x464   :  { %466 = vst.msk [vmem:[#allocation2 + $0x8] sm:$0xff] %vm137_vm2, %v461_v45  ;;  %v623_v47 = vmul.f32 0.17677669, %v541_v46  ;;  %v1659_v48 = vpop.f32.mrb[5].mxu1  ;;  %v1664_v49 = vpop.f32.mrb[5].mxu0 }
 0x466   :  { %v625_v50 = vsel %vm137_vm2, %v623_v47, -inf }
 0x467   :  { %v619_v51 = vpop.f32.mrb[6].mxu1  ;;  %626 = vmax.xlane.f32.xlu1 %v625_v50 }
 0x468   :  { %v624_v52 = vmul.f32 0.17677669, %v619_v51  ;;  %v1669_v53 = vpop.f32.mrb[7].mxu1 }
 0x46a   :  { %v628_v54 = vsel %vm137_vm2, %v624_v52, -inf }
 0x46b   :  { %629 = vmax.xlane.f32.xlu0 %v628_v54 }
 0x478   :  { %647 = vrot.lane.b32.xlu1 %v1941_v10, %s1866_s17 }
 0x47c   :  { %812 = vrot.lane.b32.xlu1 %v1941_v10, %s1867_s18 }
 0x480   :  { %890 = vrot.lane.b32.xlu1 %v1939_v9, %s1867_s18 }
 0x481   :  { %723 = vrot.lane.b32.xlu0 %v1939_v9, %s1866_s17 }
 0x485   :  { %810 = vrot.lane.b32.xlu0 %v1941_v10, %s1868_s19 }
 0x4f4   :  { %v627_v55 = vpop.xlane.xlu1 %626 }
 0x4f5   :  { %v631_v56 = vsub.f32 %v623_v47, %v627_v55 }
 0x4f7   :  { %v633_v57 = vmul.f32 1.442695, %v631_v56 }
 0x4f8   :  { %v648_v58 = vpop.permute.xlu1 %647  ;;  %v630_v59 = vpop.xlane.xlu0 %629 }
 0x4f9   :  { %1756 = vpow2.f32 %v633_v57  ;;  %v632_v60 = vsub.f32 %v624_v52, %v630_v59  ;;  %1671 = vmatpush3.msra.mxu0 %v648_v58 }
 0x4fa   :  { %1680 = vmatprep.subr.mxu0 %v1860_v8 }
 0x4fb   :  { %v635_v61 = vmul.f32 1.442695, %v632_v60 }
 0x4fc   :  { %v724_v62 = vpop.permute.xlu0 %723  ;;  %v813_v3 = vpop.permute.xlu1 %812 }
 0x4fd   :  { %1758 = vpow2.f32 %v635_v61  ;;  %1676 = vmatpush3.msra.mxu1 %v724_v62 }
 0x4fe   :  { %1685 = vmatprep.subr.mxu1 %v1860_v8 }
 0x500   :  { %v891_v4 = vpop.permute.xlu1 %890  ;;  %v811_v14 = vpop.permute.xlu0 %810 }
 0x503   :  { %v1757_v63 = vpop.eup %1756 }
 0x504   :  { %v637_v0 = vsel %vm137_vm2, %v1757_v63, 0.0 }
 0x505   :  { %638 = vadd.xlane.f32.xlu1 %v637_v0 }
 0x507   :  { %v1759_v1 = vpop.eup %1758 }
 0x508   :  { %v640_v2 = vsel %vm137_vm2, %v1759_v1, 0.0 }
 0x509   :  { %641 = vadd.xlane.f32.xlu1 %v640_v2 }
 0x51a   :  { %888 = vrot.lane.b32.xlu1 %v1939_v9, %s1868_s19 }
 0x592   :  { %v639_v5 = vpop.xlane.xlu1 %638 }
 0x593   :  { %1760 = vrcp.f32 %v639_v5 }
 0x596   :  { %v642_v6 = vpop.xlane.xlu1 %641 }
 0x597   :  { %1762 = vrcp.f32 %v642_v6 }
 0x59a   :  { %v889_v15 = vpop.permute.xlu1 %888 }
 0x59d   :  { %v1761_v7 = vpop.eup %1760 }
 0x59e   :  { %v645_v11 = vmul.f32 %v1761_v7, %v1757_v63 }
 0x5a0   :  { %1673 = vmatmul.mubr.msk.f32.vlgmr.msra.gmra.mrb[6].mxu0 %vm137_vm2, %v645_v11 }
 0x5a1   :  { %v1763_v12 = vpop.eup %1762  ;;  %1681 = vmatpush3.xpose.msk.msra.mxu0 %vm137_vm2, %v813_v3  ;;  %1682 = vmatprep.mubr.msk.f32.mxu0 %vm1861_vm1, %v1860_v8 }
 0x5a2   :  { %v646_v13 = vmul.f32 %v1763_v12, %v1759_v1  ;;  %1690 = vmatprep.subr.mxu0 %v1860_v8 }
 0x5a4   :  { %1678 = vmatmul.mubr.msk.f32.vlgmr.msra.gmra.mrb[8].mxu1 %vm137_vm2, %v646_v13  ;;  %1683 = vmatmul.mubr.msk.f32.vlgmr.msra.gmra.mrb[8].mxu0 %vm137_vm2, %v811_v14 }
 0x5a5   :  { %1686 = vmatpush3.xpose.msk.msra.mxu1 %vm137_vm2, %v891_v4  ;;  %1687 = vmatprep.mubr.msk.f32.mxu1 %vm1861_vm1, %v1860_v8 }
 0x5a6   :  { %1695 = vmatprep.subr.mxu1 %v1860_v8  ;;  %1692 = vmatprep.mubr.msk.f32.mxu0 %vm1861_vm1, %v1860_v8 }
 0x5a8   :  { %1688 = vmatmul.mubr.msk.f32.vlgmr.msra.gmra.mrb[10].mxu1 %vm137_vm2, %v889_v15 }
 0x5a9   :  { %1697 = vmatprep.mubr.msk.f32.mxu1 %vm1861_vm1, %v1860_v8 }
 0x673   :  { %v2015_v16 = vpop.f32.mrb[6].mxu0 }
 0x674   :  { %v1674_v17 = vpop.f32.mrb[7].mxu0 }
 0x677   :  { %v2017_v18 = vpop.f32.mrb[8].mxu1  ;;  %v884_v19 = vpop.f32.mrb[8].mxu0 }
 0x678   :  { %v966_v20 = vmul.f32 0.17677669, %v884_v19  ;;  %v1679_v21 = vpop.f32.mrb[9].mxu1  ;;  %v1684_v22 = vpop.f32.mrb[9].mxu0 }
 0x67a   :  { %v968_v23 = vsel %vm137_vm2, %v966_v20, -inf }
 0x67b   :  { %v962_v24 = vpop.f32.mrb[10].mxu1  ;;  %969 = vmax.xlane.f32.xlu0 %v968_v23 }
 0x67c   :  { %v967_v25 = vmul.f32 0.17677669, %v962_v24  ;;  %v1689_v26 = vpop.f32.mrb[11].mxu1 }
 0x67e   :  { %v971_v27 = vsel %vm137_vm2, %v967_v25, -inf }
 0x67f   :  { %972 = vmax.xlane.f32.xlu1 %v971_v27 }
 0x690   :  { %990 = vrot.lane.b32.xlu1 %v1941_v10, %s1869_s20 }
 0x691   :  { %1066 = vrot.lane.b32.xlu0 %v1939_v9, %s1869_s20 }
 0x694   :  { %1155 = vrot.lane.b32.xlu1 %v1941_v10, %s1870_s21 }
 0x698   :  { %1233 = vrot.lane.b32.xlu1 %v1939_v9, %s1870_s21 }
 0x69c   :  { %1231 = vrot.lane.b32.xlu1 %v1939_v9, %s1871_s22 }
 0x708   :  { %v970_v28 = vpop.xlane.xlu0 %969 }
 0x709   :  { %v974_v29 = vsub.f32 %v966_v20, %v970_v28 }
 0x70b   :  { %v976_v30 = vmul.f32 1.442695, %v974_v29 }
 0x70c   :  { %v973_v31 = vpop.xlane.xlu1 %972  ;;  %v1067_v32 = vpop.permute.xlu0 %1066 }
 0x70d   :  { %1764 = vpow2.f32 %v976_v30  ;;  %v975_v33 = vsub.f32 %v967_v25, %v973_v31  ;;  %1696 = vmatpush3.msra.mxu1 %v1067_v32 }
 0x70e   :  { %1705 = vmatprep.subr.mxu1 %v1860_v8 }
 0x70f   :  { %v978_v34 = vmul.f32 1.442695, %v975_v33 }
 0x710   :  { %v991_v35 = vpop.permute.xlu1 %990 }
 0x711   :  { %1766 = vpow2.f32 %v978_v34  ;;  %1691 = vmatpush3.msra.mxu0 %v991_v35 }
 0x712   :  { %1700 = vmatprep.subr.mxu0 %v1860_v8 }
 0x714   :  { %v1156_v42 = vpop.permute.xlu1 %1155 }
 0x717   :  { %v1765_v36 = vpop.eup %1764 }
 0x718   :  { %v980_v37 = vsel %vm137_vm2, %v1765_v36, 0.0  ;;  %v1234_v46 = vpop.permute.xlu1 %1233 }
 0x719   :  { %981 = vadd.xlane.f32.xlu0 %v980_v37 }
 0x71b   :  { %v1767_v38 = vpop.eup %1766 }
 0x71c   :  { %v983_v39 = vsel %vm137_vm2, %v1767_v38, 0.0  ;;  %v1232_v49 = vpop.permute.xlu1 %1231 }
 0x71d   :  { %984 = vadd.xlane.f32.xlu0 %v983_v39 }
 0x733   :  { %1153 = vrot.lane.b32.xlu0 %v1941_v10, %s1871_s22 }
 0x7a6   :  { %v982_v40 = vpop.xlane.xlu0 %981 }
 0x7a7   :  { %1768 = vrcp.f32 %v982_v40 }
 0x7aa   :  { %v985_v41 = vpop.xlane.xlu0 %984 }
 0x7ab   :  { %1770 = vrcp.f32 %v985_v41 }
 0x7ae   :  { %v1154_v48 = vpop.permute.xlu0 %1153 }
 0x7b1   :  { %v1769_v43 = vpop.eup %1768 }
 0x7b2   :  { %v988_v44 = vmul.f32 %v1769_v43, %v1765_v36 }
 0x7b4   :  { %1693 = vmatmul.mubr.msk.f32.vlgmr.msra.gmra.mrb[10].mxu0 %vm137_vm2, %v988_v44 }
 0x7b5   :  { %v1771_v45 = vpop.eup %1770  ;;  %1701 = vmatpush3.xpose.msk.msra.mxu0 %vm137_vm2, %v1156_v42  ;;  %1702 = vmatprep.mubr.msk.f32.mxu0 %vm1861_vm1, %v1860_v8 }
 0x7b6   :  { %v989_v47 = vmul.f32 %v1771_v45, %v1767_v38  ;;  %1710 = vmatprep.subr.mxu0 %v1860_v8 }
 0x7b8   :  { %1698 = vmatmul.mubr.msk.f32.vlgmr.msra.gmra.mrb[12].mxu1 %vm137_vm2, %v989_v47  ;;  %1703 = vmatmul.mubr.msk.f32.vlgmr.msra.gmra.mrb[12].mxu0 %vm137_vm2, %v1154_v48  ;;  %v1589_v47 = vld [vmem:[%s2090_s2] ss:$0 sm:$0xff] }
 0x7b9   :  { %1706 = vmatpush3.xpose.msk.msra.mxu1 %vm137_vm2, %v1234_v46  ;;  %1707 = vmatprep.mubr.msk.f32.mxu1 %vm1861_vm1, %v1860_v8 }
 0x7ba   :  { %1715 = vmatprep.subr.mxu1 %v1860_v8  ;;  %1712 = vmatprep.mubr.msk.f32.mxu0 %vm1861_vm1, %v1860_v8 }
 0x7bc   :  { %1708 = vmatmul.mubr.msk.f32.vlgmr.msra.gmra.mrb[14].mxu1 %vm137_vm2, %v1232_v49  ;;  %v1590_v49 = vld [vmem:[%s2091_s3] ss:$0 sm:$0xff] }
 0x7bd   :  { %1717 = vmatprep.mubr.msk.f32.mxu1 %vm1861_vm1, %v1860_v8 }
 0x887   :  { %v1062_v50 = vpop.f32.mrb[10].mxu0 }
 0x888   :  { %v1694_v51 = vpop.f32.mrb[11].mxu0 }
 0x88b   :  { %v1138_v52 = vpop.f32.mrb[12].mxu1  ;;  %v1227_v53 = vpop.f32.mrb[12].mxu0 }
 0x88c   :  { %v1309_v54 = vmul.f32 0.17677669, %v1227_v53  ;;  %v1699_v55 = vpop.f32.mrb[13].mxu1  ;;  %v1704_v56 = vpop.f32.mrb[13].mxu0 }
 0x88e   :  { %v1311_v57 = vsel %vm137_vm2, %v1309_v54, -inf }
 0x88f   :  { %v1305_v58 = vpop.f32.mrb[14].mxu1  ;;  %1312 = vmax.xlane.f32.xlu0 %v1311_v57 }
 0x890   :  { %v1310_v59 = vmul.f32 0.17677669, %v1305_v58  ;;  %v1709_v60 = vpop.f32.mrb[15].mxu1 }
 0x892   :  { %v1314_v61 = vsel %vm137_vm2, %v1310_v59, -inf }
 0x893   :  { %1315 = vmax.xlane.f32.xlu1 %v1314_v61 }
 0x8a4   :  { %1333 = vrot.lane.b32.xlu1 %v1941_v10, %s1872_s23 }
 0x8a8   :  { %801 = vrot.lane.b32.xlu1 %v2015_v16, %s1858_s26 }
 0x8ac   :  { %803 = vrot.lane.b32.xlu1 %v2017_v18, %s1858_s26 }
 0x8b0   :  { %1146 = vrot.lane.b32.xlu1 %v1138_v52, %s1873_s24 }
 0x91c   :  { %v1313_v8 = vpop.xlane.xlu0 %1312 }
 0x91d   :  { %v1317_v62 = vsub.f32 %v1309_v54, %v1313_v8 }
 0x91f   :  { %v1319_v63 = vmul.f32 1.442695, %v1317_v62 }
 0x920   :  { %v1316_v0 = vpop.xlane.xlu1 %1315 }
 0x921   :  { %1772 = vpow2.f32 %v1319_v63  ;;  %v1318_v1 = vsub.f32 %v1310_v59, %v1316_v0 }
 0x923   :  { %v1321_v2 = vmul.f32 1.442695, %v1318_v1 }
 0x924   :  { %v1334_v3 = vpop.permute.xlu1 %1333 }
 0x925   :  { %1774 = vpow2.f32 %v1321_v2  ;;  %1711 = vmatpush3.msra.mxu0 %v1334_v3 }
 0x928   :  { %v802_v10 = vpop.permute.xlu1 %801 }
 0x929   :  { %808 = vst.msk [vmem:[#allocation2] sm:$0xff] %vm807_vm3, %v802_v10 }
 0x92b   :  { %v1773_v4 = vpop.eup %1772 }
 0x92c   :  { %v804_v5 = vpop.permute.xlu1 %803  ;;  %v1323_v6 = vsel %vm137_vm2, %v1773_v4, 0.0 }
 0x92d   :  { %809 = vst.msk [vmem:[#allocation2 + $0x8] sm:$0xff] %vm807_vm3, %v804_v5  ;;  %1324 = vadd.xlane.f32.xlu0 %v1323_v6 }
 0x92f   :  { %v1775_v7 = vpop.eup %1774 }
 0x930   :  { %v1147_v11 = vpop.permute.xlu1 %1146  ;;  %v1326_v12 = vsel %vm137_vm2, %v1775_v7, 0.0 }
 0x931   :  { %1152 = vst.msk [vmem:[#allocation2 + $0x8] sm:$0xff] %vm1150_vm4, %v1147_v11  ;;  %1327 = vadd.xlane.f32.xlu0 %v1326_v12 }
 0x947   :  { %1409 = vrot.lane.b32.xlu0 %v1939_v9, %s1872_s23 }
 0x94b   :  { %1144 = vrot.lane.b32.xlu0 %v1062_v50, %s1873_s24 }
 0x9ba   :  { %v1325_v13 = vpop.xlane.xlu0 %1324 }
 0x9bb   :  { %1776 = vrcp.f32 %v1325_v13 }
 0x9be   :  { %v1328_v14 = vpop.xlane.xlu0 %1327 }
 0x9bf   :  { %1778 = vrcp.f32 %v1328_v14 }
 0x9c2   :  { %v1410_v15 = vpop.permute.xlu0 %1409 }
 0x9c3   :  { %1716 = vmatpush3.msra.mxu1 %v1410_v15 }
 0x9c5   :  { %v1777_v16 = vpop.eup %1776 }
 0x9c6   :  { %v1331_v17 = vmul.f32 %v1777_v16, %v1773_v4  ;;  %v1145_v18 = vpop.permute.xlu0 %1144 }
 0x9c7   :  { %1151 = vst.msk [vmem:[#allocation2] sm:$0xff] %vm1150_vm4, %v1145_v18 }
 0x9c8   :  { %1713 = vmatmul.mubr.msk.f32.vlgmr.msra.gmra.mrb[14].mxu0 %vm137_vm2, %v1331_v17 }
 0x9c9   :  { %v1779_v19 = vpop.eup %1778 }
 0x9ca   :  { %v1332_v20 = vmul.f32 %v1779_v19, %v1775_v7 }
 0x9cc   :  { %1718 = vmatmul.mubr.msk.f32.vlgmr.msra.gmra.mrb[16].mxu1 %vm137_vm2, %v1332_v20 }
 0xa9b   :  { %v1405_v21 = vpop.f32.mrb[14].mxu0 }
 0xa9c   :  { %1487 = vrot.lane.b32.xlu0 %v1405_v21, %s1874_s27  ;;  %v1714_v9 = vpop.f32.mrb[15].mxu0 }
 0xa9f   :  { %v1481_v22 = vpop.f32.mrb[16].mxu1 }
 0xaa0   :  { %1489 = vrot.lane.b32.xlu1 %v1481_v22, %s1874_s27  ;;  %v1719_v23 = vpop.f32.mrb[17].mxu1 }
 0xb0e   :  { %v1488_v24 = vpop.permute.xlu0 %1487 }
 0xb0f   :  { %1494 = vst.msk [vmem:[#allocation2] sm:$0xff] %vm1493_vm5, %v1488_v24 }
 0xb12   :  { %v1490_v25 = vpop.permute.xlu1 %1489 }
 0xb13   :  { %1495 = vst.msk [vmem:[#allocation2 + $0x8] sm:$0xff] %vm1493_vm5, %v1490_v25 }
 0xb16   :  { %v1496_v26 = vld [vmem:[#allocation2] sm:$0xff] }
 0xb17   :  { %v1498_v27 = vsel %vm52_vm0, %v1496_v26, 0.0 }
 0xb18   :  { %1499 = vadd.xlane.f32.xlu0 %v1498_v27 }
 0xb1a   :  { %v1497_v28 = vld [vmem:[#allocation2 + $0x8] sm:$0xff] }
 0xb1b   :  { %v1501_v29 = vsel %vm52_vm0, %v1497_v28, 0.0 }
 0xb1c   :  { %1502 = vadd.xlane.f32.xlu1 %v1501_v29 }
 0xba5   :  { %v1500_v30 = vpop.xlane.xlu0 %1499 }
 0xba6   :  { %v1505_v31 = vmul.f32 0.03125, %v1500_v30 }
 0xba8   :  { %v1507_v32 = vsub.f32 %v1496_v26, %v1505_v31 }
 0xba9   :  { %v1503_v33 = vpop.xlane.xlu1 %1502 }
 0xbaa   :  { %v1506_v34 = vmul.f32 0.03125, %v1503_v33  ;;  %v1509_v35 = vmul.f32 %v1507_v32, %v1507_v32 }
 0xbac   :  { %v1508_v36 = vsub.f32 %v1497_v28, %v1506_v34  ;;  %v1511_v37 = vsel %vm52_vm0, %v1509_v35, 0.0 }
 0xbad   :  { %1512 = vadd.xlane.f32.xlu0 %v1511_v37 }
 0xbae   :  { %v1510_v38 = vmul.f32 %v1508_v36, %v1508_v36 }
 0xbb0   :  { %v1514_v39 = vsel %vm52_vm0, %v1510_v38, 0.0 }
 0xbb1   :  { %1515 = vadd.xlane.f32.xlu0 %v1514_v39 }
 0xc3a   :  { %v1513_v40 = vpop.xlane.xlu0 %1512 }
 0xc3b   :  { %v1517_v41 = vmul.f32 0.03125, %v1513_v40 }
 0xc3d   :  { %v1519_v42 = vadd.f32 1e-05, %v1517_v41 }
 0xc3e   :  { %v1516_v43 = vpop.xlane.xlu0 %1515 }
 0xc3f   :  { %1780 = vrsqrt.f32 %v1519_v42  ;;  %v1518_v44 = vmul.f32 0.03125, %v1516_v43 }
 0xc41   :  { %v1520_v45 = vadd.f32 1e-05, %v1518_v44 }
 0xc43   :  { %1782 = vrsqrt.f32 %v1520_v45 }
 0xc49   :  { %v1781_v46 = vpop.eup %1780 }
 0xc4a   :  { %v1523_v48 = vmul.f32 %v1781_v46, %v1507_v32 }
 0xc4c   :  { %v1532_v50 = vmul.f32 %v1589_v47, %v1523_v48 }
 0xc4d   :  { %v1783_v51 = vpop.eup %1782 }
 0xc4e   :  { %v1524_v52 = vmul.f32 %v1783_v51, %v1508_v36  ;;  %v1541_v53 = vadd.f32 %v1590_v49, %v1532_v50 }
 0xc50   :  { %v1533_v54 = vmul.f32 %v1589_v47, %v1524_v52  ;;  %1543 = vst.msk [vmem:[#allocation8] sm:$0xff] %vm52_vm0, %v1541_v53 }
 0xc52   :  { %v1542_v55 = vadd.f32 %v1590_v49, %v1533_v54 }
 0xc54   :  { %1544 = vst.msk [vmem:[#allocation8 + $0x8] sm:$0xff] %vm52_vm0, %v1542_v55 }
 0xc55   :  { %1839 = shalt.err (!%p1836_p6)
}
 0xc56   :  { %s1840_s9 = scalar_lea.hbm %s2092_s4, 256 }
 0xc57   :  { %p1841_p7 = scmp.ne.s32.totalorder %s2092_s4, %s1840_s9  ;;  %p1844_p8 = scmp.lt.u32.totalorder %s1840_s9, %s2092_s4 }
 0xc59   :  { %p1846_p9 = pnand %p1844_p8, %p1841_p7 }
 0xc5b   :  { %1849 = shalt.err (!%p1846_p9)
}
 0xc5c   :  { %1556 = dma.vmem_to_hbm [thread:$0]  %s1551_s7, 256, %s2092_s4, [#allocation5], %s1857_s25, %s1857_s25, %s1858_s26  }
 0xc5d   :  { %1854 = dma.done.wait [#allocation5], 256  }
 0xc5e   :  { %1855 = vsyncadd [#allocation5], 4294967040 }
 0xc5f   :  { %1560 = vsyncpa [#allocation4], 1 }
 0xc60   :  { %1561 = vsyncpa [#allocation7], 1 }
 0xc61   :  { %1562 = vsyncpa [#allocation5], 1 }

</bundles_post_ra>
